<compile_context>
chip_gen: v7x
topology: tpu7x:2x2x1
jax: 0.10.0
libtpu: 0.0.40
codegen_flags: <defaults>
</compile_context>

<pallas_src>
import jax
import jax.numpy as jnp
from jax.experimental import pallas as pl
from jax.experimental.pallas import tpu as pltpu

# ---- vocabulary bookkeeping (mirrors the PyTorch script) -------------------
sentences = [
    'jack like dog', 'jack like cat', 'jack like animal', 'dog cat animal',
    'banana apple cat dog like', 'dog fish milk like', 'dog cat animal like',
    'jack like apple', 'apple like', 'jack like banana',
    'apple banana jack movie book music like', 'cat dog hate', 'cat dog like'
]
word_sequence = ' '.join(sentences).split()
vocab = sorted(set(word_sequence))          # sorted -> deterministic ordering
voc_size = len(vocab)                       # 13
embedding_size = 2

_LANES = 128
_SUBLANES = 8


# ---- Pallas kernel ----------------------------------------------------------
def _make_kernel(tb: int, emb: int):
    """tb: batch-tile rows (multiple of 8).  emb: embedding size (static)."""

    def kernel(idx_ref, w_ref, v_ref, out_ref):
        base = pl.program_id(0) * tb
        # Embedding gather: one dynamic sublane slice of W per row in the tile.
        rows = [w_ref[pl.ds(idx_ref[base + b], 1), :] for b in range(tb)]
        hidden = jnp.concatenate(rows, axis=0)            # [tb, 128] (lanes >= emb are zero)
        # hidden @ V as a VPU outer product (emb is tiny; MXU would be <1% utilized).
        acc = hidden[:, 0:1] * v_ref[0:1, :]
        for e in range(1, emb):
            acc = acc + hidden[:, e:e + 1] * v_ref[e:e + 1, :]
        out_ref[...] = acc                                # lane-dense [tb, 128] store

    return kernel


def word2vec_forward(idx, W, V):
    """Computes one_hot(idx) @ W @ V, i.e. the PyTorch module's forward for
    one-hot center-word inputs, returning a [batch, voc_size] f32 array."""
    batch = idx.shape[0]
    voc, emb = W.shape
    assert V.shape == (emb, voc)

    tb = _SUBLANES                                        # batch tile (sublane aligned)
    batch_pad = pl.cdiv(batch, tb) * tb
    w_rows_pad = pl.cdiv(voc, _SUBLANES) * _SUBLANES
    w_cols_pad = pl.cdiv(emb, _LANES) * _LANES
    v_rows_pad = pl.cdiv(emb, _SUBLANES) * _SUBLANES
    n_pad = pl.cdiv(voc, _LANES) * _LANES                 # lane-dense output width

    # Padded operands (zero padding; padded idx rows point at row 0, sliced off later).
    idx_p = jnp.zeros((batch_pad,), jnp.int32).at[:batch].set(idx.astype(jnp.int32))
    W_p = jnp.zeros((w_rows_pad, w_cols_pad), jnp.float32).at[:voc, :emb].set(W)
    V_p = jnp.zeros((v_rows_pad, n_pad), jnp.float32).at[:emb, :voc].set(V)

    grid_spec = pltpu.PrefetchScalarGridSpec(
        num_scalar_prefetch=1,                            # idx -> SMEM, visible to kernel
        grid=(batch_pad // tb,),
        in_specs=[
            pl.BlockSpec(W_p.shape, lambda i, idx_sref: (0, 0)),   # W fully VMEM resident
            pl.BlockSpec(V_p.shape, lambda i, idx_sref: (0, 0)),   # V fully VMEM resident
        ],
        out_specs=pl.BlockSpec((tb, n_pad), lambda i, idx_sref: (i, 0)),
    )

    out_padded = pl.pallas_call(
        _make_kernel(tb, emb),
        out_shape=jax.ShapeDtypeStruct((batch_pad, n_pad), jnp.float32),
        grid_spec=grid_spec,
        compiler_params=pltpu.CompilerParams(
            dimension_semantics=("parallel",),            # batch tiles split across TCs (v7x)
        ),
    )(idx_p, W_p, V_p)

    return out_padded[:batch, :voc]


if __name__ == "__main__":
    key = jax.random.PRNGKey(0)
    kW, kV, kX = jax.random.split(key, 3)

    # Parameters (same shapes as nn.Parameter(torch.randn(...)))
    W = jax.random.normal(kW, (voc_size, embedding_size), dtype=jnp.float32)
    V = jax.random.normal(kV, (embedding_size, voc_size), dtype=jnp.float32)

    # Input: center-word indices (the PyTorch script feeds one_hot(idx)).
    batch = 8
    idx = jax.random.randint(kX, (batch,), 0, voc_size)

    out = word2vec_forward(idx, W, V)
    out = jax.block_until_ready(out)

    # Reference: the original module's forward on one-hot rows.
    X = jax.nn.one_hot(idx, voc_size, dtype=jnp.float32)
    ref = X @ W @ V
    assert out.shape == (batch, voc_size)
    assert jnp.allclose(out, ref, atol=1e-5, rtol=1e-5)

    print("KERNEL_OK")
</pallas_src>

<mosaic_0001>
module attributes {stable_mosaic.version = 11 : i64} {
  func.func @kernel(%arg0: i32, %arg1: memref<8xi32, #tpu.memory_space<smem>>, %arg2: memref<16x128xf32, #tpu.memory_space<vmem>>, %arg3: memref<8x128xf32, #tpu.memory_space<vmem>>, %arg4: memref<8x128xf32, #tpu.memory_space<vmem>>) attributes {dimension_semantics = [#tpu.dimension_semantics<parallel>], iteration_bounds = array<i64: 1>, scalar_prefetch = 1 : i64, scratch_operands = 0 : i64, tpu.core_type = #tpu.core_type<tc>, window_params = [{pipeline_mode = #tpu.pipeline_mode<synchronous>, transform_indices = @transform_0, window_bounds = array<i64: 16, 128>}, {pipeline_mode = #tpu.pipeline_mode<synchronous>, transform_indices = @transform_1, window_bounds = array<i64: 8, 128>}, {transform_indices = @transform_2, window_bounds = array<i64: 8, 128>}]} {
    %c8_i32 = arith.constant 8 : i32
    %0 = arith.muli %arg0, %c8_i32 : i32
    %c0_i32 = arith.constant 0 : i32
    %1 = arith.addi %0, %c0_i32 : i32
    %2 = arith.index_cast %1 : i32 to index
    %3 = memref.load %arg1[%2] : memref<8xi32, #tpu.memory_space<smem>>
    %4 = arith.index_cast %3 : i32 to index
    %c0 = arith.constant 0 : index
    %5 = vector.load %arg2[%4, %c0] : memref<16x128xf32, #tpu.memory_space<vmem>>, vector<1x128xf32>
    %c1_i32 = arith.constant 1 : i32
    %6 = arith.addi %0, %c1_i32 : i32
    %7 = arith.index_cast %6 : i32 to index
    %8 = memref.load %arg1[%7] : memref<8xi32, #tpu.memory_space<smem>>
    %9 = arith.index_cast %8 : i32 to index
    %c0_0 = arith.constant 0 : index
    %10 = vector.load %arg2[%9, %c0_0] : memref<16x128xf32, #tpu.memory_space<vmem>>, vector<1x128xf32>
    %c2_i32 = arith.constant 2 : i32
    %11 = arith.addi %0, %c2_i32 : i32
    %12 = arith.index_cast %11 : i32 to index
    %13 = memref.load %arg1[%12] : memref<8xi32, #tpu.memory_space<smem>>
    %14 = arith.index_cast %13 : i32 to index
    %c0_1 = arith.constant 0 : index
    %15 = vector.load %arg2[%14, %c0_1] : memref<16x128xf32, #tpu.memory_space<vmem>>, vector<1x128xf32>
    %c3_i32 = arith.constant 3 : i32
    %16 = arith.addi %0, %c3_i32 : i32
    %17 = arith.index_cast %16 : i32 to index
    %18 = memref.load %arg1[%17] : memref<8xi32, #tpu.memory_space<smem>>
    %19 = arith.index_cast %18 : i32 to index
    %c0_2 = arith.constant 0 : index
    %20 = vector.load %arg2[%19, %c0_2] : memref<16x128xf32, #tpu.memory_space<vmem>>, vector<1x128xf32>
    %c4_i32 = arith.constant 4 : i32
    %21 = arith.addi %0, %c4_i32 : i32
    %22 = arith.index_cast %21 : i32 to index
    %23 = memref.load %arg1[%22] : memref<8xi32, #tpu.memory_space<smem>>
    %24 = arith.index_cast %23 : i32 to index
    %c0_3 = arith.constant 0 : index
    %25 = vector.load %arg2[%24, %c0_3] : memref<16x128xf32, #tpu.memory_space<vmem>>, vector<1x128xf32>
    %c5_i32 = arith.constant 5 : i32
    %26 = arith.addi %0, %c5_i32 : i32
    %27 = arith.index_cast %26 : i32 to index
    %28 = memref.load %arg1[%27] : memref<8xi32, #tpu.memory_space<smem>>
    %29 = arith.index_cast %28 : i32 to index
    %c0_4 = arith.constant 0 : index
    %30 = vector.load %arg2[%29, %c0_4] : memref<16x128xf32, #tpu.memory_space<vmem>>, vector<1x128xf32>
    %c6_i32 = arith.constant 6 : i32
    %31 = arith.addi %0, %c6_i32 : i32
    %32 = arith.index_cast %31 : i32 to index
    %33 = memref.load %arg1[%32] : memref<8xi32, #tpu.memory_space<smem>>
    %34 = arith.index_cast %33 : i32 to index
    %c0_5 = arith.constant 0 : index
    %35 = vector.load %arg2[%34, %c0_5] : memref<16x128xf32, #tpu.memory_space<vmem>>, vector<1x128xf32>
    %c7_i32 = arith.constant 7 : i32
    %36 = arith.addi %0, %c7_i32 : i32
    %37 = arith.index_cast %36 : i32 to index
    %38 = memref.load %arg1[%37] : memref<8xi32, #tpu.memory_space<smem>>
    %39 = arith.index_cast %38 : i32 to index
    %c0_6 = arith.constant 0 : index
    %40 = vector.load %arg2[%39, %c0_6] : memref<16x128xf32, #tpu.memory_space<vmem>>, vector<1x128xf32>
    %41 = tpu.concatenate %5, %10, %15, %20, %25, %30, %35, %40 in 0 : vector<1x128xf32>, vector<1x128xf32>, vector<1x128xf32>, vector<1x128xf32>, vector<1x128xf32>, vector<1x128xf32>, vector<1x128xf32>, vector<1x128xf32> -> vector<8x128xf32>
    %42 = vector.extract_strided_slice %41 {offsets = [0, 0], sizes = [8, 1], strides = [1, 1]} : vector<8x128xf32> to vector<8x1xf32>
    %c0_7 = arith.constant 0 : index
    %c0_8 = arith.constant 0 : index
    %43 = vector.load %arg3[%c0_7, %c0_8] : memref<8x128xf32, #tpu.memory_space<vmem>>, vector<1x128xf32>
    %44 = vector.broadcast %42 : vector<8x1xf32> to vector<8x128xf32>
    %45 = vector.broadcast %43 : vector<1x128xf32> to vector<8x128xf32>
    %46 = arith.mulf %44, %45 : vector<8x128xf32>
    %47 = vector.extract_strided_slice %41 {offsets = [0, 1], sizes = [8, 1], strides = [1, 1]} : vector<8x128xf32> to vector<8x1xf32>
    %c1 = arith.constant 1 : index
    %c0_9 = arith.constant 0 : index
    %48 = vector.load %arg3[%c1, %c0_9] : memref<8x128xf32, #tpu.memory_space<vmem>>, vector<1x128xf32>
    %49 = vector.broadcast %47 : vector<8x1xf32> to vector<8x128xf32>
    %50 = vector.broadcast %48 : vector<1x128xf32> to vector<8x128xf32>
    %51 = arith.mulf %49, %50 : vector<8x128xf32>
    %52 = arith.addf %46, %51 : vector<8x128xf32>
    %c0_10 = arith.constant 0 : index
    %c0_11 = arith.constant 0 : index
    %53 = vector.load %arg4[%c0_10, %c0_11] : memref<8x128xf32, #tpu.memory_space<vmem>>, vector<8x128xf32>
    tpu.vector_store %arg4[%c0_10, %c0_11], %52 {strides = array<i32>} : memref<8x128xf32, #tpu.memory_space<vmem>>, vector<8x128xf32>,
    return
  }
  func.func @transform_0(%arg0: i32, %arg1: memref<8xi32, #tpu.memory_space<smem>>) -> (i32, i32) {
    %c0_i32 = arith.constant 0 : i32
    %c0_i32_0 = arith.constant 0 : i32
    %c0_i32_1 = arith.constant 0 : i32
    return %c0_i32, %c0_i32_0 : i32, i32
  }
  func.func @transform_1(%arg0: i32, %arg1: memref<8xi32, #tpu.memory_space<smem>>) -> (i32, i32) {
    %c0_i32 = arith.constant 0 : i32
    %c0_i32_0 = arith.constant 0 : i32
    %c0_i32_1 = arith.constant 0 : i32
    return %c0_i32, %c0_i32_0 : i32, i32
  }
  func.func @transform_2(%arg0: i32, %arg1: memref<8xi32, #tpu.memory_space<smem>>) -> (i32, i32) {
    %c0_i32 = arith.constant 0 : i32
    %c0_i32_0 = arith.constant 0 : i32
    return %arg0, %c0_i32 : i32, i32
  }
}

</mosaic_0001>

<bundles_post_ra>
// kernel: tpu_custom_call.1
= control target key start
LH: loop header
LB: loop body
LE: loop exit
PB: predicated region body
PF: predicated region fallthrough
CT: control target
= control target key end

     0   :  { %s337_s0 = inlined_call_operand.hbm [shape: s32[8], index: 0, kind: input, shape index: {}]   ;;  %s338_s1 = inlined_call_operand.hbm [shape: f32[16,128], index: 1, kind: input, shape index: {}]   ;;  %s339_s2 = inlined_call_operand.hbm [shape: f32[8,128], index: 2, kind: input, shape index: {}]   ;;  %s340_s3 = inlined_call_operand.hbm [shape: f32[8,128], index: 3, kind: output, shape index: {}]  }
   0x1   :  { %s176_s14 = scalar_lea.hbm %s337_s0, 16 }
   0x2   :  { %p177_p0 = scmp.ne.s32.totalorder %s337_s0, %s176_s14  ;;  %p180_p1 = scmp.lt.u32.totalorder %s176_s14, %s337_s0 }
   0x4   :  { %p182_p2 = pnand %p180_p1, %p177_p0 }
   0x6   :  { %185 = shalt.err (!%p182_p2)  }
   0x7   :  { %s260_s19 = smov [#allocation3]  }
   0x8   :  { %9 = dma.hbm_to_smem %s337_s0, 16, %s260_s19, [#allocation2] }
   0x9   :  { %252 = dma.done.wait [#allocation2], 16 }
   0xa   :  { %253 = vsyncadd [#allocation2], 4294967280 }
   0xb   :  { %11 = sfence }
   0xc   :  { %12 = vsyncpa [#allocation5], 0 }
   0xd   :  { %13 = vsyncpa [#allocation8], 0 }
   0xe   :  { %14 = vsyncpa [#allocation6], 0  ;;  %s261_s22 = smov [#allocation4]   ;;  %s186_s26 = scalar_lea.hbm %s338_s1, 256 }
   0xf   :  { %s20_s23 = sshll.u32 %s261_s22, 4  ;;  %p187_p3 = scmp.ne.s32.totalorder %s338_s1, %s186_s26  ;;  %s21_s23 = int_to_ptr.vmem [resolvable:$true] %s20_s23 }
  0x10   :  { %p190_p4 = scmp.lt.u32.totalorder %s186_s26, %s338_s1 }
  0x12   :  { %p192_p5 = pnand %p190_p4, %p187_p3 }
  0x14   :  { %195 = shalt.err (!%p192_p5)
}
  0x15   :  { %s196_s0 = scalar_lea.vmem %s21_s23, 256  ;;  %p201_p7 = scmp.lt.s32.totalorder %s21_s23, %s21_s23 }
  0x16   :  { %p197_p6 = scmp.ne.s32.totalorder %s21_s23, %s196_s0  ;;  %p202_p8 = scmp.lt.s32.totalorder %s196_s0, %s196_s0 }
  0x18   :  { %p203_p9 = por %p202_p8, %p201_p7 }
  0x1a   :  { %p204_p10 = pnand %p203_p9, %p197_p6 }
  0x1c   :  { %207 = shalt.err (!%p204_p10)
}
  0x1d   :  { %s262_s4 = smov 128   ;;  %s263_s5 = smov 8  }
  0x1e   :  { %26 = dma.hbm_to_vmem [thread:$0]  %s338_s1, 256, %s21_s23, [#allocation5], %s262_s4, %s262_s4, %s263_s5  }
  0x1f   :  { %s264_s8 = smov [#allocation7]   ;;  %s208_s12 = scalar_lea.hbm %s339_s2, 128 }
  0x20   :  { %s33_s9 = sshll.u32 %s264_s8, 4  ;;  %p209_p11 = scmp.ne.s32.totalorder %s339_s2, %s208_s12  ;;  %s34_s9 = int_to_ptr.vmem [resolvable:$true] %s33_s9 }
  0x21   :  { %p212_p12 = scmp.lt.u32.totalorder %s208_s12, %s339_s2 }
  0x23   :  { %p214_p13 = pnand %p212_p12, %p209_p11 }
  0x25   :  { %217 = shalt.err (!%p214_p13)
}
  0x26   :  { %s218_s17 = scalar_lea.vmem %s34_s9, 128  ;;  %p223_p1 = scmp.lt.s32.totalorder %s34_s9, %s34_s9 }
  0x27   :  { %p219_p0 = scmp.ne.s32.totalorder %s34_s9, %s218_s17  ;;  %p224_p2 = scmp.lt.s32.totalorder %s218_s17, %s218_s17 }
  0x29   :  { %p225_p3 = por %p224_p2, %p223_p1 }
  0x2b   :  { %p226_p4 = pnand %p225_p3, %p219_p0 }
  0x2d   :  { %229 = shalt.err (!%p226_p4)
}
  0x2e   :  { %36 = dma.hbm_to_vmem [thread:$0]  %s339_s2, 128, %s34_s9, [#allocation8]  }
  0x2f   :  { %254 = dma.done.wait [#allocation5], 256  }
  0x30   :  { %255 = vsyncadd [#allocation5], 4294967040 }
  0x31   :  { %256 = dma.done.wait [#allocation8], 128  }
  0x32   :  { %257 = vsyncadd [#allocation8], 4294967168  ;;  %v265_v0 = vmov 0   ;;  %s44_s19 = sld [smem:[#allocation3]]  ;;  %s157_s20 = sld [smem:[#allocation3 + $0x1]]  ;;  %vm96_vm0 = vcmask 1040384  }
  0x33   :  { %174 = vset.pattern.permute.xlu0 %v265_v0  ;;  %s158_s21 = sld [smem:[#allocation3 + $0x2]]  ;;  %s159_s22 = sld [smem:[#allocation3 + $0x3]]  ;;  %vm98_vm1 = vcmask 1041408   ;;  %vm100_vm2 = vcmask 1042432   ;;  %vm102_vm3 = vcmask 1043456   ;;  %vm104_vm4 = vcmask 1044480  }
  0x34   :  { %s160_s23 = sld [smem:[#allocation3 + $0x4]]  ;;  %s161_s24 = sld [smem:[#allocation3 + $0x5]]  ;;  %vm106_vm5 = vcmask 1045504   ;;  %vm108_vm6 = vcmask 1046528   ;;  %v266_v23 = vmov 1  }
  0x35   :  { %s162_s25 = sld [smem:[#allocation3 + $0x6]]  ;;  %s163_s26 = sld [smem:[#allocation3 + $0x7]]  ;;  %v164_v25 = vld [vmem:[#allocation7] ss:$0 sm:$0xff]  ;;  %v165_v26 = vld [vmem:[#allocation7 + $0x1] ss:$0 sm:$0xff] }
  0x36   :  { %s267_s6 = smov [#allocation9]  }
  0x37   :  { %s139_s7 = sshll.u32 %s267_s6, 4  ;;  %s140_s7 = int_to_ptr.vmem [resolvable:$true] %s139_s7 }
  0x38   :  { %s45_s27 = scalar_lea.vmem [#allocation4], %s44_s19  ;;  %s49_s28 = scalar_lea.vmem [#allocation4], %s157_s20 }
  0x39   :  { %v46_v1 = vld [vmem:[%s45_s27] sm:$0x1]  ;;  %s53_s2 = scalar_lea.vmem [#allocation4], %s158_s21  ;;  %s57_s29 = scalar_lea.vmem [#allocation4], %s159_s22 }
  0x3a   :  { %v50_v2 = vld [vmem:[%s49_s28] sm:$0x1]  ;;  %s61_s30 = scalar_lea.vmem [#allocation4], %s160_s23  ;;  %s65_s0 = scalar_lea.vmem [#allocation4], %s161_s24 }
  0x3b   :  { %v54_v3 = vld [vmem:[%s53_s2] sm:$0x1]  ;;  %s69_s4 = scalar_lea.vmem [#allocation4], %s162_s25  ;;  %v76_v8 = vrot.slane %v50_v2, 7  ;;  %s73_s5 = scalar_lea.vmem [#allocation4], %s163_s26 }
  0x3c   :  { %v58_v4 = vld [vmem:[%s57_s29] sm:$0x1]  ;;  %v79_v9 = vrot.slane %v54_v3, 6  ;;  %s230_s8 = scalar_lea.vmem %s140_s7, 128  ;;  %p235_p6 = scmp.lt.s32.totalorder %s140_s7, %s140_s7 }
  0x3d   :  { %v62_v5 = vld [vmem:[%s61_s30] sm:$0x1]  ;;  %v82_v11 = vrot.slane %v58_v4, 5  ;;  %v97_v14 = vsel %vm96_vm0, %v46_v1, %v76_v8  ;;  %p231_p5 = scmp.ne.s32.totalorder %s140_s7, %s230_s8  ;;  %p236_p7 = scmp.lt.s32.totalorder %s230_s8, %s230_s8 }
  0x3e   :  { %v66_v6 = vld [vmem:[%s65_s0] sm:$0x1]  ;;  %v85_v12 = vrot.slane %v62_v5, 4  ;;  %v99_v16 = vsel %vm98_vm1, %v97_v14, %v79_v9 }
  0x3f   :  { %v70_v7 = vld [vmem:[%s69_s4] sm:$0x1]  ;;  %v88_v13 = vrot.slane %v66_v6, 3  ;;  %v101_v18 = vsel %vm100_vm2, %v99_v16, %v82_v11  ;;  %p237_p8 = por %p236_p7, %p235_p6 }
  0x40   :  { %v74_v10 = vld [vmem:[%s73_s5] sm:$0x1]  ;;  %v91_v15 = vrot.slane %v70_v7, 2  ;;  %v103_v19 = vsel %vm102_vm3, %v101_v18, %v85_v12 }
  0x41   :  { %v94_v17 = vrot.slane %v74_v10, 1  ;;  %v105_v20 = vsel %vm104_vm4, %v103_v19, %v88_v13  ;;  %p238_p9 = pnand %p237_p8, %p231_p5 }
  0x42   :  { %v107_v21 = vsel %vm106_vm5, %v105_v20, %v91_v15 }
  0x43   :  { %v109_v22 = vsel %vm108_vm6, %v107_v21, %v94_v17 }
  0x44   :  { %113 = vperm.xlu0 %174, %v109_v22  }
  0x48   :  { %175 = vset.pattern.permute.xlu0 %v266_v23 }
  0x49   :  { %123 = vperm.xlu0 %175, %v109_v22  }
  0xc3   :  { %v114_v24 = vpop.permute.xlu0 %113 }
  0xc4   :  { %v120_v28 = vmul.f32 %v164_v25, %v114_v24 }
  0xc8   :  { %v124_v27 = vpop.permute.xlu0 %123 }
  0xc9   :  { %v130_v29 = vmul.f32 %v165_v26, %v124_v27 }
  0xcb   :  { %v131_v30 = vadd.f32 %v130_v29, %v120_v28 }
  0xcd   :  { %132 = vst [vmem:[#allocation9] sm:$0xff] %v131_v30 }
  0xce   :  { %241 = shalt.err (!%p238_p9)
}
  0xcf   :  { %s242_s11 = scalar_lea.hbm %s340_s3, 128 }
  0xd0   :  { %p243_p10 = scmp.ne.s32.totalorder %s340_s3, %s242_s11  ;;  %p246_p11 = scmp.lt.u32.totalorder %s242_s11, %s340_s3 }
  0xd2   :  { %p248_p12 = pnand %p246_p11, %p243_p10 }
  0xd4   :  { %251 = shalt.err (!%p248_p12)
}
  0xd5   :  { %142 = dma.vmem_to_hbm [thread:$0]  %s140_s7, 128, %s340_s3, [#allocation6]  }
  0xd6   :  { %258 = dma.done.wait [#allocation6], 128  }
  0xd7   :  { %259 = vsyncadd [#allocation6], 4294967168 }
  0xd8   :  { %146 = vsyncpa [#allocation5], 1 }
  0xd9   :  { %147 = vsyncpa [#allocation8], 1 }
  0xda   :  { %148 = vsyncpa [#allocation6], 1 }

</bundles_post_ra>
